<compile_context>
chip_gen: v5e
topology: v5e:2x2
jax: 0.10.0
libtpu: 0.0.40
codegen_flags: <defaults>
</compile_context>

<pallas_src>
import jax
import jax.numpy as jnp
from jax.experimental import pallas as pl
from jax.experimental.pallas import tpu as pltpu


def _zero_kernel(x_ref, o_ref):
    # Read kept on purpose: faithful to torch's x.mul(0.0) (NaN/Inf -> NaN).
    o_ref[...] = x_ref[...] * jnp.asarray(0.0, dtype=x_ref.dtype)


_LANE_WIDTHS = (2048, 1024, 512, 256, 128)   # widest lane-dense layout first
_TARGET_BLOCK_BYTES = 2 << 20                # ~2 MiB per block per buffer


def _zero_2d(x2d: jnp.ndarray) -> jnp.ndarray:
    """x2d * 0.0 where x2d is (rows, L) with L a multiple of 128."""
    rows, lanes = x2d.shape
    itemsize = jnp.dtype(x2d.dtype).itemsize

    # Rows per block so one (block_rows, lanes) buffer is ~2 MiB.
    rows_per_block = max(8, _TARGET_BLOCK_BYTES // (lanes * itemsize))
    if rows_per_block >= rows:
        block_rows = rows                      # single block == full array dims
    else:
        block_rows = max(8, (rows_per_block // 8) * 8)   # keep sublane-aligned

    grid = (pl.cdiv(rows, block_rows),)

    return pl.pallas_call(
        _zero_kernel,
        out_shape=jax.ShapeDtypeStruct(x2d.shape, x2d.dtype),
        grid=grid,
        in_specs=[pl.BlockSpec((block_rows, lanes), lambda i: (i, 0))],
        out_specs=pl.BlockSpec((block_rows, lanes), lambda i: (i, 0)),
        compiler_params=pltpu.CompilerParams(
            dimension_semantics=("parallel",)),
    )(x2d)


def zero_forward(x: jnp.ndarray, stride: int = 1) -> jnp.ndarray:
    """Pallas implementation of darts `Zero`: x.mul(0.0), spatially strided if stride != 1."""
    if stride != 1:
        # TODO(synk): fold the ::stride selection into the kernel (strided /
        # sub-sampled DMA) to avoid this extra XLA strided-slice pass; lane-dim
        # strided reads are not portably supported by Mosaic today.
        x = x[..., ::stride, ::stride]

    out_shape = x.shape
    total = x.size
    if total == 0:
        return x

    # Pick the widest lane-dense flattening (last dim a multiple of 128).
    lane_w = next((w for w in _LANE_WIDTHS if total % w == 0), None)
    if lane_w is None:
        # TODO(synk): ragged element count (not a multiple of 128) — fall back
        # to XLA elementwise with identical x.mul(0.0) semantics.
        return x * jnp.asarray(0.0, dtype=x.dtype)

    x2d = x.reshape(total // lane_w, lane_w)   # contiguous reshape: free
    out2d = _zero_2d(x2d)
    return out2d.reshape(out_shape)


if __name__ == "__main__":
    key = jax.random.PRNGKey(0)
    x = jax.random.normal(key, (2, 4, 16, 16), dtype=jnp.float32)

    # stride = 1
    y1 = jax.block_until_ready(zero_forward(x, stride=1))
    assert y1.shape == (2, 4, 16, 16)
    assert bool(jnp.all(y1 == 0.0))

    # stride = 2
    y2 = jax.block_until_ready(zero_forward(x, stride=2))
    assert y2.shape == (2, 4, 8, 8)
    assert bool(jnp.all(y2 == 0.0))

    # NaN propagation (torch x.mul(0.0) semantics): NaN stays NaN, rest are 0.
    xn = x.at[0, 0, 0, 0].set(jnp.nan)
    yn = jax.block_until_ready(zero_forward(xn, stride=1))
    assert bool(jnp.isnan(yn[0, 0, 0, 0]))
    assert bool(jnp.all(jnp.nan_to_num(yn, nan=0.0) == 0.0))

    # bf16 path (different itemsize -> different block_rows choice).
    xh = jax.random.normal(key, (2, 4, 16, 16), dtype=jnp.bfloat16)
    yh = jax.block_until_ready(zero_forward(xh, stride=1))
    assert yh.dtype == jnp.bfloat16
    assert bool(jnp.all(yh == 0.0))

    # Exercise the multi-block, pipelined ("parallel") grid path.
    xb = jax.random.normal(key, (2, 4, 256, 256), dtype=jnp.float32)
    yb = jax.block_until_ready(zero_forward(xb, stride=1))
    assert yb.shape == (2, 4, 256, 256)
    assert bool(jnp.all(yb == 0.0))

    print("KERNEL_OK")
</pallas_src>

<mosaic_0001>
module attributes {stable_mosaic.version = 11 : i64} {
  func.func @_zero_kernel(%arg0: i32, %arg1: memref<1x2048xf32, #tpu.memory_space<vmem>>, %arg2: memref<1x2048xf32, #tpu.memory_space<vmem>>) attributes {dimension_semantics = [#tpu.dimension_semantics<parallel>], iteration_bounds = array<i64: 1>, scalar_prefetch = 0 : i64, scratch_operands = 0 : i64, tpu.core_type = #tpu.core_type<tc>, window_params = [{transform_indices = @transform_0, window_bounds = array<i64: 1, 2048>}, {transform_indices = @transform_1, window_bounds = array<i64: 1, 2048>}]} {
    %c0 = arith.constant 0 : index
    %c0_0 = arith.constant 0 : index
    %0 = vector.load %arg1[%c0, %c0_0] : memref<1x2048xf32, #tpu.memory_space<vmem>>, vector<1x2048xf32>
    %cst = arith.constant 0.000000e+00 : f32
    %1 = vector.broadcast %cst : f32 to vector<1x2048xf32>
    %2 = arith.mulf %0, %1 : vector<1x2048xf32>
    %c0_1 = arith.constant 0 : index
    %c0_2 = arith.constant 0 : index
    %3 = vector.load %arg2[%c0_1, %c0_2] : memref<1x2048xf32, #tpu.memory_space<vmem>>, vector<1x2048xf32>
    tpu.vector_store %arg2[%c0_1, %c0_2], %2 {strides = array<i32>} : memref<1x2048xf32, #tpu.memory_space<vmem>>, vector<1x2048xf32>,
    return
  }
  func.func @transform_0(%arg0: i32) -> (i32, i32) {
    %c0_i32 = arith.constant 0 : i32
    %c0_i32_0 = arith.constant 0 : i32
    return %arg0, %c0_i32 : i32, i32
  }
  func.func @transform_1(%arg0: i32) -> (i32, i32) {
    %c0_i32 = arith.constant 0 : i32
    %c0_i32_0 = arith.constant 0 : i32
    return %arg0, %c0_i32 : i32, i32
  }
}

</mosaic_0001>

<bundles_post_ra>
// kernel: tpu_custom_call.1
= control target key start
LH: loop header
LB: loop body
LE: loop exit
PB: predicated region body
PF: predicated region fallthrough
CT: control target
= control target key end

     0   :  { %6 = vsyncpa [#allocation3], 0  ;;  %s118_s0 = inlined_call_operand.hbm [shape: f32[1,2048], index: 0, kind: input, shape index: {}]   ;;  %s119_s1 = inlined_call_operand.hbm [shape: f32[1,2048], index: 1, kind: output, shape index: {}]  }
   0x1   :  { %7 = vsyncpa [#allocation4], 0  ;;  %s13_s8 = sshll.u32 %s118_s0, 4  ;;  %s100_s9 = smov [#allocation2]   ;;  %s14_s8 = int_to_ptr.hbm [resolvable:$true] %s13_s8 }
   0x2   :  { %s15_s10 = sshll.u32 %s100_s9, 4  ;;  %s16_s10 = int_to_ptr.vmem [resolvable:$true] %s15_s10 }
   0x3   :  { %18 = dma.hbm_to_vmem [thread:$0]  %s14_s8, 256, %s16_s10, [#allocation3]  }
   0x4   :  { %96 = dma.done.wait [#allocation3], 256  }
   0x5   :  { %97 = vsyncadd [#allocation3], 4294967040  ;;  %s101_s11 = smov [#allocation5]   ;;  %s36_s15 = sshll.u32 %s119_s1, 4  ;;  %v23_v0 = vld [vmem:[#allocation2] sm:$0xff]  ;;  %v24_v1 = vld [vmem:[#allocation2 + $0x8] sm:$0xff]  ;;  %s37_s15 = int_to_ptr.hbm [resolvable:$true] %s36_s15 }
   0x6   :  { %s34_s12 = sshll.u32 %s101_s11, 4  ;;  %v25_v2 = vmul.f32 0.0, %v23_v0  ;;  %v26_v3 = vmul.f32 0.0, %v24_v1  ;;  %s35_s12 = int_to_ptr.vmem [resolvable:$true] %s34_s12 }
   0x8   :  { %27 = vst [vmem:[#allocation5] sm:$0xff] %v25_v2 }
   0x9   :  { %28 = vst [vmem:[#allocation5 + $0x8] sm:$0xff] %v26_v3 }
   0xa   :  { %39 = dma.vmem_to_hbm [thread:$0]  %s35_s12, 256, %s37_s15, [#allocation4]  }
   0xb   :  { %98 = dma.done.wait [#allocation4], 256  }
   0xc   :  { %99 = vsyncadd [#allocation4], 4294967040 }
   0xd   :  { %44 = vsyncpa [#allocation3], 1 }
   0xe   :  { %45 = vsyncpa [#allocation4], 1 }

</bundles_post_ra>
